<compile_context>
chip_gen: v6e
topology: v6e:2x2x1
jax: 0.10.0
libtpu: 0.0.40
codegen_flags: <defaults>
</compile_context>

<pallas_src>
import jax
import jax.numpy as jnp
from jax.experimental import pallas as pl
from jax.experimental.pallas import tpu as pltpu  # noqa: F401  (TPU backend)

FC1_IN, FC1_OUT = 10, 10
FC2_IN, FC2_OUT = 10, 1


def shared_module_net_kernel(x_ref, w1_ref, b1_ref, w2_ref, b2_ref, o_ref):
    # submod1(x) + submod2(x): same shared Linear(10, 10); a + a == 2*a exactly.
    h = jnp.dot(x_ref[...], w1_ref[...],
                preferred_element_type=jnp.float32) + b1_ref[...]
    h = h + h
    # multiname1(h) + multiname2(h): same shared Linear(10, 1).
    # out_features == 1 -> broadcast multiply + lane reduce (VPU + XLU) rather
    # than an N=1 MXU matmul (w2 kept in PyTorch (out=1, in=10) row layout).
    y = jnp.sum(h * w2_ref[...], axis=1, keepdims=True) + b2_ref[...]
    o_ref[...] = (y + y).astype(o_ref.dtype)


def prepare_params(w1, b1, w2, b2):
    """One-time conversion from PyTorch layout to kernel layout (not per-call).

    w1: (10, 10) (out, in) -> transposed to (in, out) so the kernel does x @ W.
    w2: (1, 10)  (out, in) -> kept as a (1, 10) row for the multiply-reduce.
    biases -> 2-D rows for VMEM residency.
    """
    return (
        jnp.asarray(w1, jnp.float32).T,               # (10, 10) (in, out)
        jnp.asarray(b1, jnp.float32).reshape(1, -1),  # (1, 10)
        jnp.asarray(w2, jnp.float32),                 # (1, 10)
        jnp.asarray(b2, jnp.float32).reshape(1, -1),  # (1, 1)
    )


def shared_module_net_forward(x, w1t, b1, w2, b2):
    """x: (B, 10) float32. Params as returned by prepare_params()."""
    B, F = x.shape
    assert F == FC1_IN, f"expected {FC1_IN} input features, got {F}"
    # Whole-array blocks: block_shape == array shape => no (8,128) constraint.
    full = lambda shape: pl.BlockSpec(shape, lambda: tuple(0 for _ in shape))
    return pl.pallas_call(
        shared_module_net_kernel,
        out_shape=jax.ShapeDtypeStruct((B, FC2_OUT), jnp.float32),
        grid=(),
        in_specs=[
            full((B, FC1_IN)),        # x
            full((FC1_IN, FC1_OUT)),  # W1 (transposed, (in, out))
            full((1, FC1_OUT)),       # b1
            full((1, FC2_IN)),        # W2 row (out=1, in=10)
            full((1, FC2_OUT)),       # b2
        ],
        out_specs=full((B, FC2_OUT)),
    )(x.astype(jnp.float32), w1t, b1, w2, b2)


def init_params(key):
    """Deterministic init mimicking nn.Linear default (uniform +/- 1/sqrt(fan_in))."""
    k1, k2, k3, k4 = jax.random.split(key, 4)
    bound1 = 1.0 / jnp.sqrt(jnp.float32(FC1_IN))
    bound2 = 1.0 / jnp.sqrt(jnp.float32(FC2_IN))
    w1 = jax.random.uniform(k1, (FC1_OUT, FC1_IN), jnp.float32, -bound1, bound1)
    b1 = jax.random.uniform(k2, (FC1_OUT,), jnp.float32, -bound1, bound1)
    w2 = jax.random.uniform(k3, (FC2_OUT, FC2_IN), jnp.float32, -bound2, bound2)
    b2 = jax.random.uniform(k4, (FC2_OUT,), jnp.float32, -bound2, bound2)
    return w1, b1, w2, b2


if __name__ == "__main__":
    key = jax.random.PRNGKey(0)
    kx, kp = jax.random.split(key)
    batch = 2
    x = jax.random.normal(kx, (batch, FC1_IN), jnp.float32)
    w1, b1, w2, b2 = init_params(kp)

    params = prepare_params(w1, b1, w2, b2)   # one-time, outside the call path
    out = shared_module_net_forward(x, *params)
    out = jax.block_until_ready(out)

    # Pure-JAX reference with the exact PyTorch forward semantics.
    h = x @ w1.T + b1
    h = h + h                    # submod1(x) + submod2(x) (shared inner linear)
    ref = h @ w2.T + b2
    ref = ref + ref              # multiname1(h) + multiname2(h) (shared linear)

    assert out.shape == (batch, FC2_OUT)
    assert jnp.allclose(out, ref, atol=1e-4, rtol=1e-4)

    print("KERNEL_OK")
</pallas_src>

<mosaic_0001>
module attributes {stable_mosaic.version = 11 : i64} {
  func.func @shared_module_net_kernel(%arg0: memref<2x10xf32, #tpu.memory_space<vmem>>, %arg1: memref<10x10xf32, #tpu.memory_space<vmem>>, %arg2: memref<1x10xf32, #tpu.memory_space<vmem>>, %arg3: memref<1x10xf32, #tpu.memory_space<vmem>>, %arg4: memref<1x1xf32, #tpu.memory_space<vmem>>, %arg5: memref<2x1xf32, #tpu.memory_space<vmem>>) attributes {dimension_semantics = [], scalar_prefetch = 0 : i64, scratch_operands = 0 : i64, tpu.core_type = #tpu.core_type<tc>} {
    %c0 = arith.constant 0 : index
    %c0_0 = arith.constant 0 : index
    %0 = vector.load %arg0[%c0, %c0_0] : memref<2x10xf32, #tpu.memory_space<vmem>>, vector<2x10xf32>
    %c0_1 = arith.constant 0 : index
    %c0_2 = arith.constant 0 : index
    %1 = vector.load %arg1[%c0_1, %c0_2] : memref<10x10xf32, #tpu.memory_space<vmem>>, vector<10x10xf32>
    %cst = arith.constant dense<0.000000e+00> : vector<2x10xf32>
    %2 = tpu.matmul %0, %1, %cst {dimension_numbers = #tpu.dot_dimension_numbers<[1], [0], [0], [1], [0, 0, 1, 1], [], []>} : vector<2x10xf32>, vector<10x10xf32>, vector<2x10xf32> -> vector<2x10xf32>
    %c0_3 = arith.constant 0 : index
    %c0_4 = arith.constant 0 : index
    %3 = vector.load %arg2[%c0_3, %c0_4] : memref<1x10xf32, #tpu.memory_space<vmem>>, vector<1x10xf32>
    %4 = vector.broadcast %3 : vector<1x10xf32> to vector<2x10xf32>
    %5 = arith.addf %2, %4 : vector<2x10xf32>
    %6 = arith.addf %5, %5 : vector<2x10xf32>
    %c0_5 = arith.constant 0 : index
    %c0_6 = arith.constant 0 : index
    %7 = vector.load %arg3[%c0_5, %c0_6] : memref<1x10xf32, #tpu.memory_space<vmem>>, vector<1x10xf32>
    %8 = vector.broadcast %7 : vector<1x10xf32> to vector<2x10xf32>
    %9 = arith.mulf %6, %8 : vector<2x10xf32>
    %cst_7 = arith.constant dense<0.000000e+00> : vector<2xf32>
    %10 = vector.multi_reduction <add>, %9, %cst_7 [1] : vector<2x10xf32> to vector<2xf32>
    %11 = vector.shape_cast %10 : vector<2xf32> to vector<2x1xf32>
    %c0_8 = arith.constant 0 : index
    %c0_9 = arith.constant 0 : index
    %12 = vector.load %arg4[%c0_8, %c0_9] : memref<1x1xf32, #tpu.memory_space<vmem>>, vector<1x1xf32>
    %13 = vector.broadcast %12 : vector<1x1xf32> to vector<2x1xf32>
    %14 = arith.addf %11, %13 : vector<2x1xf32>
    %15 = arith.addf %14, %14 : vector<2x1xf32>
    %c0_10 = arith.constant 0 : index
    %c0_11 = arith.constant 0 : index
    %16 = vector.load %arg5[%c0_10, %c0_11] : memref<2x1xf32, #tpu.memory_space<vmem>>, vector<2x1xf32>
    tpu.vector_store %arg5[%c0_10, %c0_11], %15 {strides = array<i32>} : memref<2x1xf32, #tpu.memory_space<vmem>>, vector<2x1xf32>,
    return
  }
}

</mosaic_0001>

<bundles_post_ra>
// kernel: tpu_custom_call.1
= control target key start
LH: loop header
LB: loop body
LE: loop exit
PB: predicated region body
PF: predicated region fallthrough
CT: control target
= control target key end

     0   :  { %s248_s0 = inlined_call_operand.vmem [shape: f32[2,10], index: 0, kind: input, shape index: {}]   ;;  %s249_s1 = inlined_call_operand.hbm [shape: f32[10,10], index: 1, kind: input, shape index: {}]   ;;  %s250_s2 = inlined_call_operand.vmem [shape: f32[1,10], index: 2, kind: input, shape index: {}]   ;;  %s251_s3 = inlined_call_operand.vmem [shape: f32[1,10], index: 3, kind: input, shape index: {}]   ;;  %s252_s4 = inlined_call_operand.<no memory space> [shape: f32[1,1], index: 4, kind: input, shape index: {}]   ;;  %s253_s5 = inlined_call_operand.vmem [shape: f32[2,1], index: 5, kind: output, shape index: {}]  }
   0x1   :  { %v10_v0 = vstv %s252_s4 }
   0x2   :  { %11 = vst [vmem:[#allocation2] sm:$0x1] %v10_v0 }
   0x3   :  { %12 = vsyncpa [#allocation4], 0  ;;  %s195_s20 = smov [#allocation3]  }
   0x4   :  { %s20_s21 = sshll.u32 %s195_s20, 4  ;;  %s21_s21 = int_to_ptr.vmem [resolvable:$true] %s20_s21 }
   0x5   :  { %s181_s22 = scalar_lea.vmem %s21_s21, 256  ;;  %p186_p1 = scmp.lt.s32.totalorder %s21_s21, %s21_s21 }
   0x6   :  { %p182_p0 = scmp.ne.s32.totalorder %s21_s21, %s181_s22  ;;  %p187_p2 = scmp.lt.s32.totalorder %s181_s22, %s181_s22 }
   0x8   :  { %p188_p3 = por %p187_p2, %p186_p1 }
   0xa   :  { %p189_p4 = pnand %p188_p3, %p182_p0 }
   0xc   :  { %192 = shalt.err (!%p189_p4)
}
   0xd   :  { %s196_s23 = smov 128   ;;  %s197_s24 = smov 8  }
   0xe   :  { %26 = dma.hbm_to_vmem [thread:$0]  %s249_s1, 256, %s21_s21, [#allocation4], %s196_s23, %s196_s23, %s197_s24  }
   0xf   :  { %193 = dma.done.wait [#allocation4], 256  }
  0x10   :  { %194 = vsyncadd [#allocation4], 4294967040  ;;  %v198_v1 = vmov 0.0   ;;  %vm199_vm0 = vmmov 0   ;;  %vm50_vm1 = vcmask 1041408   ;;  %v37_v3 = vld [vmem:[#allocation3] sm:$0xff] }
  0x11   :  { %161 = vmatprep.subr.mxu0 %v198_v1  ;;  %165 = vmatprep.mubr.msk.f32.mxu0 %vm199_vm0, %v198_v1  ;;  %v38_v2 = vld [vmem:[#allocation3 + $0x8] sm:$0x3]  ;;  %v36_v4 = vld [vmem:[%s248_s0] sm:$0x3]  ;;  %vm46_vm2 = vcmask 80896   ;;  %vm133_vm3 = vcmask 74752  }
  0x12   :  { %162 = vmatpush3.msk.msra.mxu0 %vm50_vm1, %v38_v2  ;;  %v153_v5 = vld [vmem:[%s250_s2] ss:$0 sm:$0xff]  ;;  %vm146_vm4 = vcmask 1024  }
  0x13   :  { %163 = vmatprep.subr.mxu0 %v198_v1  ;;  %v156_v9 = vld [vmem:[%s251_s3] ss:$0 sm:$0xff] }
  0x14   :  { %164 = vmatpush3.msra.mxu0 %v37_v3  ;;  %v157_v13 = vld [vmem:[#allocation2] ss:$0 sm:$0xff] }
  0x15   :  { %166 = vmatmul.mubr.msk.f32.vlgmr.msra.gmra.mxu0 %vm46_vm2, %v36_v4 }
  0xd5   :  { %v120_v6 = vpop.f32.mrf.mxu0 }
  0xd6   :  { %v121_v7 = vadd.f32 %v153_v5, %v120_v6 }
  0xd7   :  { %v167_v8 = vpop.f32.mrf.mxu0 }
  0xd8   :  { %v124_v10 = vadd.f32 %v121_v7, %v121_v7 }
  0xda   :  { %v132_v11 = vmul.f32 %v156_v9, %v124_v10 }
  0xdc   :  { %v134_v12 = vsel %vm133_vm3, %v132_v11, 0.0 }
  0xdd   :  { %135 = vadd.xlane.f32.xlu0 %v134_v12 }
 0x166   :  { %v136_v14 = vpop.xlane.xlu0 %135 }
 0x167   :  { %v144_v15 = vadd.f32 %v157_v13, %v136_v14 }
 0x169   :  { %v145_v16 = vadd.f32 %v144_v15, %v144_v15 }
 0x16b   :  { %147 = vst.msk [vmem:[%s253_s5] sm:$0x3] %vm146_vm4, %v145_v16 }
 0x16c   :  { %152 = vsyncpa [#allocation4], 1 }

</bundles_post_ra>
